<compile_context>
chip_gen: v7x
topology: tpu7x:2x2x1
jax: 0.10.0
libtpu: 0.0.40
codegen_flags: <defaults>
</compile_context>

<pallas_src>
import jax
import jax.numpy as jnp
from jax.experimental import pallas as pl
from jax.experimental.pallas import tpu as pltpu  # TPU backend (kept for explicitness)

# ---------------- config (small, deterministic) ----------------
VOCAB = 64
LOGITS_PAD = 128          # lane-dense LM-head width (multiple of 128 >= VOCAB)
SEQ = 8
HIDDEN = 32
NUM_HEADS = 2
HEAD_DIM = HIDDEN // NUM_HEADS
FFN = 4 * HIDDEN
BATCH = 2


def _normalize(x, eps=1e-5):
    """LayerNorm without the affine part (gamma/beta folded into downstream weights)."""
    mu = jnp.mean(x, axis=-1, keepdims=True)
    var = jnp.mean((x - mu) ** 2, axis=-1, keepdims=True)
    return (x - mu) * jax.lax.rsqrt(var + eps)


def transformer_lm_kernel(x_ref, mask_ref, bqkv_ref, bffn_ref, blm_ref,
                          wqkv_ref, wo_ref, w1_ref, w2_ref, wlm_ref, out_ref):
    B, S, H = x_ref.shape
    x = x_ref[...]                          # (B, S, H)
    xf = x.reshape(B * S, H)                # flatten batch*seq for all dense matmuls
    mask = mask_ref[...]                    # (B, 1, S) additive key mask (0 / -1e9)

    # ---------------- self-attention block ----------------
    h = _normalize(xf)
    # gamma_ln1 folded into wqkv rows, beta_ln1 @ wqkv precomputed as bqkv;
    # 1/sqrt(HEAD_DIM) already folded into the Q columns of wqkv.
    qkv = (jnp.dot(h, wqkv_ref[...], preferred_element_type=jnp.float32)
           + bqkv_ref[...])                                                # (B*S, 3H)
    q = qkv[:, 0:H].reshape(B, S, H)
    k = qkv[:, H:2 * H].reshape(B, S, H)
    v = qkv[:, 2 * H:3 * H].reshape(B, S, H)
    wo = wo_ref[...]

    # NOTE: padding (key) mask only — bidirectional, matching the reference wrapper.
    attn = jnp.zeros((B * S, H), jnp.float32)
    for hh in range(NUM_HEADS):             # static unroll (NUM_HEADS = 2)
        lo, hi = hh * HEAD_DIM, (hh + 1) * HEAD_DIM
        qh, kh, vh = q[:, :, lo:hi], k[:, :, lo:hi], v[:, :, lo:hi]        # (B, S, D)
        s = jnp.einsum('bqd,bkd->bqk', qh, kh,
                       preferred_element_type=jnp.float32) + mask          # (B, S, S)
        s = s - jnp.max(s, axis=-1, keepdims=True)
        p = jnp.exp(s)
        p = p * pl.reciprocal(jnp.sum(p, axis=-1, keepdims=True), approx=True)
        oh = jnp.einsum('bqk,bkd->bqd', p, vh,
                        preferred_element_type=jnp.float32)                # (B, S, D)
        # concat(o_0, o_1) @ Wo  ==  sum_h  o_h @ Wo[h*D:(h+1)*D, :]
        attn = attn + jnp.dot(oh.reshape(B * S, HEAD_DIM), wo[lo:hi, :],
                              preferred_element_type=jnp.float32)
    xf = xf + attn

    # ---------------- MLP block (gamma_ln2 folded into w1, beta_ln2 -> bffn) ----------
    h = _normalize(xf)
    ff = (jnp.dot(h, w1_ref[...], preferred_element_type=jnp.float32)
          + bffn_ref[...])                                                 # (B*S, FFN)
    ff = jax.nn.gelu(ff, approximate=True)
    xf = xf + jnp.dot(ff, w2_ref[...], preferred_element_type=jnp.float32)

    # ---------------- LM head (gamma_lnf folded into wlm, beta_lnf -> blm; 128 lanes) --
    h = _normalize(xf)
    logits = (jnp.dot(h, wlm_ref[...], preferred_element_type=jnp.float32)
              + blm_ref[...])                                              # (B*S, 128)
    out_ref[...] = logits.reshape(B, S, LOGITS_PAD)


def init_params(key):
    ks = jax.random.split(key, 9)
    std = 0.02
    return {
        "tok_emb": jax.random.normal(ks[0], (VOCAB, HIDDEN), jnp.float32) * std,
        "pos_emb": jax.random.normal(ks[1], (SEQ, HIDDEN), jnp.float32) * std,
        "wq": jax.random.normal(ks[2], (HIDDEN, HIDDEN), jnp.float32) * std,
        "wk": jax.random.normal(ks[3], (HIDDEN, HIDDEN), jnp.float32) * std,
        "wv": jax.random.normal(ks[4], (HIDDEN, HIDDEN), jnp.float32) * std,
        "wo": jax.random.normal(ks[5], (HIDDEN, HIDDEN), jnp.float32) * std,
        "w1": jax.random.normal(ks[6], (HIDDEN, FFN), jnp.float32) * std,
        "w2": jax.random.normal(ks[7], (FFN, HIDDEN), jnp.float32) * std,
        "wlm": jax.random.normal(ks[8], (HIDDEN, VOCAB), jnp.float32) * std,
        "ln1_g": jnp.ones((1, HIDDEN), jnp.float32),
        "ln1_b": jnp.zeros((1, HIDDEN), jnp.float32),
        "ln2_g": jnp.ones((1, HIDDEN), jnp.float32),
        "ln2_b": jnp.zeros((1, HIDDEN), jnp.float32),
        "lnf_g": jnp.ones((1, HIDDEN), jnp.float32),
        "lnf_b": jnp.zeros((1, HIDDEN), jnp.float32),
    }


def pack_params(p):
    """One-time constant transforms: fused QKV (Q scale folded), LN affine folded into
    the consuming dense weights, LM head padded to 128 lanes."""
    scale = 1.0 / (HEAD_DIM ** 0.5)
    wqkv = jnp.concatenate([p["wq"] * scale, p["wk"], p["wv"]], axis=1)     # (H, 3H)
    wlm_pad = jnp.pad(p["wlm"], ((0, 0), (0, LOGITS_PAD - VOCAB)))          # (H, 128)
    g1, b1 = p["ln1_g"], p["ln1_b"]                                         # (1, H)
    g2, b2 = p["ln2_g"], p["ln2_b"]
    gf, bf = p["lnf_g"], p["lnf_b"]
    return {
        "tok_emb": p["tok_emb"],
        "pos_emb": p["pos_emb"],
        "wqkv": g1.T * wqkv,                 # gamma1 row-scale folded   (H, 3H)
        "bqkv": b1 @ wqkv,                   # beta1 contribution        (1, 3H)
        "wo": p["wo"],
        "w1": g2.T * p["w1"],                # gamma2 row-scale folded   (H, FFN)
        "bffn": b2 @ p["w1"],                # beta2 contribution        (1, FFN)
        "w2": p["w2"],
        "wlm_pad": gf.T * wlm_pad,           # gamma_f row-scale folded  (H, 128)
        "blm": bf @ wlm_pad,                 # beta_f contribution       (1, 128)
    }


@jax.jit
def model_wrapper_forward(input_ids, attention_mask, packed):
    """Equivalent of ModelWrapper.forward: returns logits [B, S, VOCAB]."""
    B, S = input_ids.shape
    # Glue: embedding gather + positional embedding (outside the kernel).
    # TODO(synk): embedding gather stays in JAX (jnp.take); no clean small-shape Pallas gather.
    x = jnp.take(packed["tok_emb"], input_ids, axis=0) + packed["pos_emb"][None, :S, :]
    x = x.astype(jnp.float32)                                              # (B, S, H)
    # Additive key-mask bias precomputed once per call.
    mask_bias = (1.0 - attention_mask.astype(jnp.float32))[:, None, :] * (-1e9)  # (B, 1, S)

    # Single kernel invocation (no grid): everything (~60 KB) is VMEM-resident.
    logits_pad = pl.pallas_call(
        transformer_lm_kernel,
        out_shape=jax.ShapeDtypeStruct((B, S, LOGITS_PAD), jnp.float32),
    )(x, mask_bias, packed["bqkv"], packed["bffn"], packed["blm"],
      packed["wqkv"], packed["wo"], packed["w1"], packed["w2"], packed["wlm_pad"])
    return logits_pad[:, :, :VOCAB]


if __name__ == "__main__":
    key = jax.random.PRNGKey(0)
    pkey, ikey = jax.random.split(key)
    params = init_params(pkey)
    packed = pack_params(params)

    input_ids = jax.random.randint(ikey, (BATCH, SEQ), 0, VOCAB, dtype=jnp.int32)
    # HF-style attention mask (1 = keep, 0 = pad); mask the last 2 tokens of batch 1.
    attention_mask = jnp.ones((BATCH, SEQ), jnp.int32)
    attention_mask = attention_mask.at[1, SEQ - 2:].set(0)

    logits = model_wrapper_forward(input_ids, attention_mask, packed)
    jax.block_until_ready(logits)
    assert logits.shape == (BATCH, SEQ, VOCAB)
    assert bool(jnp.all(jnp.isfinite(logits)))
    print("KERNEL_OK")
</pallas_src>

<mosaic_0001>
module attributes {stable_mosaic.version = 11 : i64} {
  func.func @transformer_lm_kernel(%arg0: memref<2x8x32xf32, #tpu.memory_space<vmem>>, %arg1: memref<2x1x8xf32, #tpu.memory_space<vmem>>, %arg2: memref<1x96xf32, #tpu.memory_space<vmem>>, %arg3: memref<1x128xf32, #tpu.memory_space<vmem>>, %arg4: memref<1x128xf32, #tpu.memory_space<vmem>>, %arg5: memref<32x96xf32, #tpu.memory_space<vmem>>, %arg6: memref<32x32xf32, #tpu.memory_space<vmem>>, %arg7: memref<32x128xf32, #tpu.memory_space<vmem>>, %arg8: memref<128x32xf32, #tpu.memory_space<vmem>>, %arg9: memref<32x128xf32, #tpu.memory_space<vmem>>, %arg10: memref<2x8x128xf32, #tpu.memory_space<vmem>>) attributes {dimension_semantics = [], scalar_prefetch = 0 : i64, scratch_operands = 0 : i64, tpu.core_type = #tpu.core_type<tc>} {
    %c0 = arith.constant 0 : index
    %c0_0 = arith.constant 0 : index
    %c0_1 = arith.constant 0 : index
    %0 = vector.load %arg0[%c0, %c0_0, %c0_1] : memref<2x8x32xf32, #tpu.memory_space<vmem>>, vector<2x8x32xf32>
    %1 = vector.shape_cast %0 : vector<2x8x32xf32> to vector<16x32xf32>
    %c0_2 = arith.constant 0 : index
    %c0_3 = arith.constant 0 : index
    %c0_4 = arith.constant 0 : index
    %2 = vector.load %arg1[%c0_2, %c0_3, %c0_4] : memref<2x1x8xf32, #tpu.memory_space<vmem>>, vector<2x1x8xf32>
    %cst = arith.constant dense<0.000000e+00> : vector<16xf32>
    %3 = vector.multi_reduction <add>, %1, %cst [1] : vector<16x32xf32> to vector<16xf32>
    %4 = vector.shape_cast %3 : vector<16xf32> to vector<16x1xf32>
    %cst_5 = arith.constant 3.200000e+01 : f32
    %5 = vector.broadcast %cst_5 : f32 to vector<16x1xf32>
    %6 = arith.divf %4, %5 : vector<16x1xf32>
    %7 = vector.broadcast %6 : vector<16x1xf32> to vector<16x32xf32>
    %8 = arith.subf %1, %7 : vector<16x32xf32>
    %9 = arith.mulf %8, %8 : vector<16x32xf32>
    %cst_6 = arith.constant dense<0.000000e+00> : vector<16xf32>
    %10 = vector.multi_reduction <add>, %9, %cst_6 [1] : vector<16x32xf32> to vector<16xf32>
    %11 = vector.shape_cast %10 : vector<16xf32> to vector<16x1xf32>
    %cst_7 = arith.constant 3.200000e+01 : f32
    %12 = vector.broadcast %cst_7 : f32 to vector<16x1xf32>
    %13 = arith.divf %11, %12 : vector<16x1xf32>
    %14 = vector.broadcast %6 : vector<16x1xf32> to vector<16x32xf32>
    %15 = arith.subf %1, %14 : vector<16x32xf32>
    %cst_8 = arith.constant 9.99999974E-6 : f32
    %16 = vector.broadcast %cst_8 : f32 to vector<16x1xf32>
    %17 = arith.addf %13, %16 : vector<16x1xf32>
    %18 = math.rsqrt %17 : vector<16x1xf32>
    %19 = vector.broadcast %18 : vector<16x1xf32> to vector<16x32xf32>
    %20 = arith.mulf %15, %19 : vector<16x32xf32>
    %c0_9 = arith.constant 0 : index
    %c0_10 = arith.constant 0 : index
    %21 = vector.load %arg5[%c0_9, %c0_10] : memref<32x96xf32, #tpu.memory_space<vmem>>, vector<32x96xf32>
    %cst_11 = arith.constant dense<0.000000e+00> : vector<16x96xf32>
    %22 = tpu.matmul %20, %21, %cst_11 {dimension_numbers = #tpu.dot_dimension_numbers<[1], [0], [0], [1], [0, 0, 1, 1], [], []>} : vector<16x32xf32>, vector<32x96xf32>, vector<16x96xf32> -> vector<16x96xf32>
    %c0_12 = arith.constant 0 : index
    %c0_13 = arith.constant 0 : index
    %23 = vector.load %arg2[%c0_12, %c0_13] : memref<1x96xf32, #tpu.memory_space<vmem>>, vector<1x96xf32>
    %24 = vector.broadcast %23 : vector<1x96xf32> to vector<16x96xf32>
    %25 = arith.addf %22, %24 : vector<16x96xf32>
    %26 = vector.extract_strided_slice %25 {offsets = [0, 0], sizes = [16, 32], strides = [1, 1]} : vector<16x96xf32> to vector<16x32xf32>
    %27 = vector.shape_cast %26 : vector<16x32xf32> to vector<2x8x32xf32>
    %28 = vector.extract_strided_slice %25 {offsets = [0, 32], sizes = [16, 32], strides = [1, 1]} : vector<16x96xf32> to vector<16x32xf32>
    %29 = vector.shape_cast %28 : vector<16x32xf32> to vector<2x8x32xf32>
    %30 = vector.extract_strided_slice %25 {offsets = [0, 64], sizes = [16, 32], strides = [1, 1]} : vector<16x96xf32> to vector<16x32xf32>
    %31 = vector.shape_cast %30 : vector<16x32xf32> to vector<2x8x32xf32>
    %c0_14 = arith.constant 0 : index
    %c0_15 = arith.constant 0 : index
    %32 = vector.load %arg6[%c0_14, %c0_15] : memref<32x32xf32, #tpu.memory_space<vmem>>, vector<32x32xf32>
    %cst_16 = arith.constant 0.000000e+00 : f32
    %33 = vector.broadcast %cst_16 : f32 to vector<16x32xf32>
    %34 = vector.extract_strided_slice %27 {offsets = [0, 0, 0], sizes = [2, 8, 16], strides = [1, 1, 1]} : vector<2x8x32xf32> to vector<2x8x16xf32>
    %35 = vector.extract_strided_slice %29 {offsets = [0, 0, 0], sizes = [2, 8, 16], strides = [1, 1, 1]} : vector<2x8x32xf32> to vector<2x8x16xf32>
    %36 = vector.extract_strided_slice %31 {offsets = [0, 0, 0], sizes = [2, 8, 16], strides = [1, 1, 1]} : vector<2x8x32xf32> to vector<2x8x16xf32>
    "tpu.trace_start"() <{level = 10 : i32, message = "bqd,bkd->bqk"}> : () -> ()
    %cst_17 = arith.constant dense<0.000000e+00> : vector<2x8x8xf32>
    %37 = tpu.matmul %34, %35, %cst_17 {dimension_numbers = #tpu.dot_dimension_numbers<[2], [2], [1], [1], [0, 0, 0, 1, 1, 1], [0], [0]>} : vector<2x8x16xf32>, vector<2x8x16xf32>, vector<2x8x8xf32> -> vector<2x8x8xf32>
    "tpu.trace_stop"() : () -> ()
    %38 = vector.broadcast %2 : vector<2x1x8xf32> to vector<2x8x8xf32>
    %39 = arith.addf %37, %38 : vector<2x8x8xf32>
    %cst_18 = arith.constant dense<0xFF800000> : vector<2x8xf32>
    %40 = vector.multi_reduction <maximumf>, %39, %cst_18 [2] : vector<2x8x8xf32> to vector<2x8xf32>
    %41 = vector.shape_cast %40 : vector<2x8xf32> to vector<2x8x1xf32>
    %42 = vector.broadcast %41 : vector<2x8x1xf32> to vector<2x8x8xf32>
    %43 = arith.subf %39, %42 : vector<2x8x8xf32>
    %44 = math.exp %43 : vector<2x8x8xf32>
    %cst_19 = arith.constant dense<0.000000e+00> : vector<2x8xf32>
    %45 = vector.multi_reduction <add>, %44, %cst_19 [2] : vector<2x8x8xf32> to vector<2x8xf32>
    %46 = vector.shape_cast %45 : vector<2x8xf32> to vector<2x8x1xf32>
    %47 = tpu.reciprocal %46 {approx = true} : vector<2x8x1xf32> -> vector<2x8x1xf32>
    %48 = vector.broadcast %47 : vector<2x8x1xf32> to vector<2x8x8xf32>
    %49 = arith.mulf %44, %48 : vector<2x8x8xf32>
    "tpu.trace_start"() <{level = 10 : i32, message = "bqk,bkd->bqd"}> : () -> ()
    %cst_20 = arith.constant dense<0.000000e+00> : vector<2x8x16xf32>
    %50 = tpu.matmul %49, %36, %cst_20 {dimension_numbers = #tpu.dot_dimension_numbers<[2], [1], [1], [2], [0, 0, 0, 1, 1, 2], [0], [0]>} : vector<2x8x8xf32>, vector<2x8x16xf32>, vector<2x8x16xf32> -> vector<2x8x16xf32>
    "tpu.trace_stop"() : () -> ()
    %51 = vector.shape_cast %50 : vector<2x8x16xf32> to vector<16x16xf32>
    %52 = vector.extract_strided_slice %32 {offsets = [0, 0], sizes = [16, 32], strides = [1, 1]} : vector<32x32xf32> to vector<16x32xf32>
    %cst_21 = arith.constant dense<0.000000e+00> : vector<16x32xf32>
    %53 = tpu.matmul %51, %52, %cst_21 {dimension_numbers = #tpu.dot_dimension_numbers<[1], [0], [0], [1], [0, 0, 1, 1], [], []>} : vector<16x16xf32>, vector<16x32xf32>, vector<16x32xf32> -> vector<16x32xf32>
    %54 = arith.addf %33, %53 : vector<16x32xf32>
    %55 = vector.extract_strided_slice %27 {offsets = [0, 0, 16], sizes = [2, 8, 16], strides = [1, 1, 1]} : vector<2x8x32xf32> to vector<2x8x16xf32>
    %56 = vector.extract_strided_slice %29 {offsets = [0, 0, 16], sizes = [2, 8, 16], strides = [1, 1, 1]} : vector<2x8x32xf32> to vector<2x8x16xf32>
    %57 = vector.extract_strided_slice %31 {offsets = [0, 0, 16], sizes = [2, 8, 16], strides = [1, 1, 1]} : vector<2x8x32xf32> to vector<2x8x16xf32>
    "tpu.trace_start"() <{level = 10 : i32, message = "bqd,bkd->bqk"}> : () -> ()
    %cst_22 = arith.constant dense<0.000000e+00> : vector<2x8x8xf32>
    %58 = tpu.matmul %55, %56, %cst_22 {dimension_numbers = #tpu.dot_dimension_numbers<[2], [2], [1], [1], [0, 0, 0, 1, 1, 1], [0], [0]>} : vector<2x8x16xf32>, vector<2x8x16xf32>, vector<2x8x8xf32> -> vector<2x8x8xf32>
    "tpu.trace_stop"() : () -> ()
    %59 = vector.broadcast %2 : vector<2x1x8xf32> to vector<2x8x8xf32>
    %60 = arith.addf %58, %59 : vector<2x8x8xf32>
    %cst_23 = arith.constant dense<0xFF800000> : vector<2x8xf32>
    %61 = vector.multi_reduction <maximumf>, %60, %cst_23 [2] : vector<2x8x8xf32> to vector<2x8xf32>
    %62 = vector.shape_cast %61 : vector<2x8xf32> to vector<2x8x1xf32>
    %63 = vector.broadcast %62 : vector<2x8x1xf32> to vector<2x8x8xf32>
    %64 = arith.subf %60, %63 : vector<2x8x8xf32>
    %65 = math.exp %64 : vector<2x8x8xf32>
    %cst_24 = arith.constant dense<0.000000e+00> : vector<2x8xf32>
    %66 = vector.multi_reduction <add>, %65, %cst_24 [2] : vector<2x8x8xf32> to vector<2x8xf32>
    %67 = vector.shape_cast %66 : vector<2x8xf32> to vector<2x8x1xf32>
    %68 = tpu.reciprocal %67 {approx = true} : vector<2x8x1xf32> -> vector<2x8x1xf32>
    %69 = vector.broadcast %68 : vector<2x8x1xf32> to vector<2x8x8xf32>
    %70 = arith.mulf %65, %69 : vector<2x8x8xf32>
    "tpu.trace_start"() <{level = 10 : i32, message = "bqk,bkd->bqd"}> : () -> ()
    %cst_25 = arith.constant dense<0.000000e+00> : vector<2x8x16xf32>
    %71 = tpu.matmul %70, %57, %cst_25 {dimension_numbers = #tpu.dot_dimension_numbers<[2], [1], [1], [2], [0, 0, 0, 1, 1, 2], [0], [0]>} : vector<2x8x8xf32>, vector<2x8x16xf32>, vector<2x8x16xf32> -> vector<2x8x16xf32>
    "tpu.trace_stop"() : () -> ()
    %72 = vector.shape_cast %71 : vector<2x8x16xf32> to vector<16x16xf32>
    %73 = vector.extract_strided_slice %32 {offsets = [16, 0], sizes = [16, 32], strides = [1, 1]} : vector<32x32xf32> to vector<16x32xf32>
    %cst_26 = arith.constant dense<0.000000e+00> : vector<16x32xf32>
    %74 = tpu.matmul %72, %73, %cst_26 {dimension_numbers = #tpu.dot_dimension_numbers<[1], [0], [0], [1], [0, 0, 1, 1], [], []>} : vector<16x16xf32>, vector<16x32xf32>, vector<16x32xf32> -> vector<16x32xf32>
    %75 = arith.addf %54, %74 : vector<16x32xf32>
    %76 = arith.addf %1, %75 : vector<16x32xf32>
    %cst_27 = arith.constant dense<0.000000e+00> : vector<16xf32>
    %77 = vector.multi_reduction <add>, %76, %cst_27 [1] : vector<16x32xf32> to vector<16xf32>
    %78 = vector.shape_cast %77 : vector<16xf32> to vector<16x1xf32>
    %cst_28 = arith.constant 3.200000e+01 : f32
    %79 = vector.broadcast %cst_28 : f32 to vector<16x1xf32>
    %80 = arith.divf %78, %79 : vector<16x1xf32>
    %81 = vector.broadcast %80 : vector<16x1xf32> to vector<16x32xf32>
    %82 = arith.subf %76, %81 : vector<16x32xf32>
    %83 = arith.mulf %82, %82 : vector<16x32xf32>
    %cst_29 = arith.constant dense<0.000000e+00> : vector<16xf32>
    %84 = vector.multi_reduction <add>, %83, %cst_29 [1] : vector<16x32xf32> to vector<16xf32>
    %85 = vector.shape_cast %84 : vector<16xf32> to vector<16x1xf32>
    %cst_30 = arith.constant 3.200000e+01 : f32
    %86 = vector.broadcast %cst_30 : f32 to vector<16x1xf32>
    %87 = arith.divf %85, %86 : vector<16x1xf32>
    %88 = vector.broadcast %80 : vector<16x1xf32> to vector<16x32xf32>
    %89 = arith.subf %76, %88 : vector<16x32xf32>
    %cst_31 = arith.constant 9.99999974E-6 : f32
    %90 = vector.broadcast %cst_31 : f32 to vector<16x1xf32>
    %91 = arith.addf %87, %90 : vector<16x1xf32>
    %92 = math.rsqrt %91 : vector<16x1xf32>
    %93 = vector.broadcast %92 : vector<16x1xf32> to vector<16x32xf32>
    %94 = arith.mulf %89, %93 : vector<16x32xf32>
    %c0_32 = arith.constant 0 : index
    %c0_33 = arith.constant 0 : index
    %95 = vector.load %arg7[%c0_32, %c0_33] : memref<32x128xf32, #tpu.memory_space<vmem>>, vector<32x128xf32>
    %cst_34 = arith.constant dense<0.000000e+00> : vector<16x128xf32>
    %96 = tpu.matmul %94, %95, %cst_34 {dimension_numbers = #tpu.dot_dimension_numbers<[1], [0], [0], [1], [0, 0, 1, 1], [], []>} : vector<16x32xf32>, vector<32x128xf32>, vector<16x128xf32> -> vector<16x128xf32>
    %c0_35 = arith.constant 0 : index
    %c0_36 = arith.constant 0 : index
    %97 = vector.load %arg3[%c0_35, %c0_36] : memref<1x128xf32, #tpu.memory_space<vmem>>, vector<1x128xf32>
    %98 = vector.broadcast %97 : vector<1x128xf32> to vector<16x128xf32>
    %99 = arith.addf %96, %98 : vector<16x128xf32>
    %100 = arith.mulf %99, %99 : vector<16x128xf32>
    %101 = arith.mulf %99, %100 : vector<16x128xf32>
    %cst_37 = arith.constant 4.471500e-02 : f32
    %102 = vector.broadcast %cst_37 : f32 to vector<16x128xf32>
    %103 = arith.mulf %102, %101 : vector<16x128xf32>
    %104 = arith.addf %99, %103 : vector<16x128xf32>
    %cst_38 = arith.constant 0.797884583 : f32
    %105 = vector.broadcast %cst_38 : f32 to vector<16x128xf32>
    %106 = arith.mulf %105, %104 : vector<16x128xf32>
    %107 = math.tanh %106 : vector<16x128xf32>
    %cst_39 = arith.constant 1.000000e+00 : f32
    %108 = vector.broadcast %cst_39 : f32 to vector<16x128xf32>
    %109 = arith.addf %108, %107 : vector<16x128xf32>
    %cst_40 = arith.constant 5.000000e-01 : f32
    %110 = vector.broadcast %cst_40 : f32 to vector<16x128xf32>
    %111 = arith.mulf %110, %109 : vector<16x128xf32>
    %112 = arith.mulf %99, %111 : vector<16x128xf32>
    %c0_41 = arith.constant 0 : index
    %c0_42 = arith.constant 0 : index
    %113 = vector.load %arg8[%c0_41, %c0_42] : memref<128x32xf32, #tpu.memory_space<vmem>>, vector<128x32xf32>
    %cst_43 = arith.constant dense<0.000000e+00> : vector<16x32xf32>
    %114 = tpu.matmul %112, %113, %cst_43 {dimension_numbers = #tpu.dot_dimension_numbers<[1], [0], [0], [1], [0, 0, 1, 1], [], []>} : vector<16x128xf32>, vector<128x32xf32>, vector<16x32xf32> -> vector<16x32xf32>
    %115 = arith.addf %76, %114 : vector<16x32xf32>
    %cst_44 = arith.constant dense<0.000000e+00> : vector<16xf32>
    %116 = vector.multi_reduction <add>, %115, %cst_44 [1] : vector<16x32xf32> to vector<16xf32>
    %117 = vector.shape_cast %116 : vector<16xf32> to vector<16x1xf32>
    %cst_45 = arith.constant 3.200000e+01 : f32
    %118 = vector.broadcast %cst_45 : f32 to vector<16x1xf32>
    %119 = arith.divf %117, %118 : vector<16x1xf32>
    %120 = vector.broadcast %119 : vector<16x1xf32> to vector<16x32xf32>
    %121 = arith.subf %115, %120 : vector<16x32xf32>
    %122 = arith.mulf %121, %121 : vector<16x32xf32>
    %cst_46 = arith.constant dense<0.000000e+00> : vector<16xf32>
    %123 = vector.multi_reduction <add>, %122, %cst_46 [1] : vector<16x32xf32> to vector<16xf32>
    %124 = vector.shape_cast %123 : vector<16xf32> to vector<16x1xf32>
    %cst_47 = arith.constant 3.200000e+01 : f32
    %125 = vector.broadcast %cst_47 : f32 to vector<16x1xf32>
    %126 = arith.divf %124, %125 : vector<16x1xf32>
    %127 = vector.broadcast %119 : vector<16x1xf32> to vector<16x32xf32>
    %128 = arith.subf %115, %127 : vector<16x32xf32>
    %cst_48 = arith.constant 9.99999974E-6 : f32
    %129 = vector.broadcast %cst_48 : f32 to vector<16x1xf32>
    %130 = arith.addf %126, %129 : vector<16x1xf32>
    %131 = math.rsqrt %130 : vector<16x1xf32>
    %132 = vector.broadcast %131 : vector<16x1xf32> to vector<16x32xf32>
    %133 = arith.mulf %128, %132 : vector<16x32xf32>
    %c0_49 = arith.constant 0 : index
    %c0_50 = arith.constant 0 : index
    %134 = vector.load %arg9[%c0_49, %c0_50] : memref<32x128xf32, #tpu.memory_space<vmem>>, vector<32x128xf32>
    %cst_51 = arith.constant dense<0.000000e+00> : vector<16x128xf32>
    %135 = tpu.matmul %133, %134, %cst_51 {dimension_numbers = #tpu.dot_dimension_numbers<[1], [0], [0], [1], [0, 0, 1, 1], [], []>} : vector<16x32xf32>, vector<32x128xf32>, vector<16x128xf32> -> vector<16x128xf32>
    %c0_52 = arith.constant 0 : index
    %c0_53 = arith.constant 0 : index
    %136 = vector.load %arg4[%c0_52, %c0_53] : memref<1x128xf32, #tpu.memory_space<vmem>>, vector<1x128xf32>
    %137 = vector.broadcast %136 : vector<1x128xf32> to vector<16x128xf32>
    %138 = arith.addf %135, %137 : vector<16x128xf32>
    %139 = vector.shape_cast %138 : vector<16x128xf32> to vector<2x8x128xf32>
    %c0_54 = arith.constant 0 : index
    %c0_55 = arith.constant 0 : index
    %c0_56 = arith.constant 0 : index
    %140 = vector.load %arg10[%c0_54, %c0_55, %c0_56] : memref<2x8x128xf32, #tpu.memory_space<vmem>>, vector<2x8x128xf32>
    tpu.vector_store %arg10[%c0_54, %c0_55, %c0_56], %139 {strides = array<i32>} : memref<2x8x128xf32, #tpu.memory_space<vmem>>, vector<2x8x128xf32>,
    return
  }
}

</mosaic_0001>

<bundles_post_ra>
// kernel: model_wrapper_forward.1
= control target key start
LH: loop header
LB: loop body
LE: loop exit
PB: predicated region body
PF: predicated region fallthrough
CT: control target
= control target key end

     0   :  { %vm40_vm0 = vcmask 261120   ;;  %s2010_s0 = inlined_call_operand.vmem [shape: f32[2,8,32], index: 0, kind: input, shape index: {}]   ;;  %s2011_s1 = inlined_call_operand.vmem [shape: f32[2,1,8], index: 1, kind: input, shape index: {}]   ;;  %s2012_s2 = inlined_call_operand.vmem [shape: f32[1,96], index: 2, kind: input, shape index: {}]   ;;  %s2013_s3 = inlined_call_operand.vmem [shape: f32[1,128], index: 3, kind: input, shape index: {}]   ;;  %s2014_s4 = inlined_call_operand.vmem [shape: f32[1,128], index: 4, kind: input, shape index: {}]   ;;  %s2015_s5 = inlined_call_operand.vmem [shape: f32[32,96], index: 5, kind: input, shape index: {}]   ;;  %s2016_s6 = inlined_call_operand.vmem [shape: f32[32,32], index: 6, kind: input, shape index: {}]   ;;  %s2017_s7 = inlined_call_operand.vmem [shape: f32[32,128], index: 7, kind: input, shape index: {}]   ;;  %s2018_s8 = inlined_call_operand.vmem [shape: f32[128,32], index: 8, kind: input, shape index: {}]   ;;  %s2019_s9 = inlined_call_operand.vmem [shape: f32[32,128], index: 9, kind: input, shape index: {}]   ;;  %s2020_s10 = inlined_call_operand.hbm [shape: f32[2,8,128], index: 10, kind: output, shape index: {}]  }
   0x1   :  { %v1774_v0 = vld [vmem:[%s2010_s0] sm:$0xff]  ;;  %v1779_v1 = vld [vmem:[%s2010_s0 + $0x8] sm:$0xff] }
   0x2   :  { %15 = vsyncpa [#allocation3], 0  ;;  %v41_v2 = vsel %vm40_vm0, %v1774_v0, 0.0  ;;  %v44_v3 = vsel %vm40_vm0, %v1779_v1, 0.0  ;;  %v68_v14 = vld [vmem:[%s2015_s5] sm:$0xff]  ;;  %v69_v15 = vld [vmem:[%s2015_s5 + $0x8] sm:$0xff] }
   0x3   :  { %42 = vadd.xlane.f32.xlu0 %v41_v2  ;;  %v70_v16 = vld [vmem:[%s2015_s5 + $0x10] sm:$0xff]  ;;  %v1574_v17 = vpack.c.bf16 %v69_v15, %v68_v14  ;;  %v71_v18 = vld [vmem:[%s2015_s5 + $0x18] sm:$0xff]  ;;  %v1706_v30 = vmov 0.0   ;;  %vm1707_vm1 = vmmov 0   ;;  %v1365_v31 = vld [vmem:[%s2012_s2] ss:$0 sm:$0xff] }
   0x4   :  { %v1578_v19 = vpack.c.bf16 %v71_v18, %v70_v16  ;;  %1483 = vmatprep.subr.mxu0 %v1706_v30  ;;  %1485 = vmatprep.mubr.msk.f32.mxu0 %vm1707_vm1, %v1706_v30  ;;  %s1708_s25 = smov 96   ;;  %vm179_vm2 = vcmask 130048   ;;  %v1833_v38 = vld [vmem:[%s2011_s1] ss:$0 sm:$0xff]  ;;  %vm331_vm3 = vcmask 64512   ;;  %s1709_s29 = smov 64  }
   0x5   :  { %1575 = vmatprep.subr.bf16.mxu1 %v1574_v17  ;;  %v1839_v42 = vld [vmem:[%s2011_s1 + $0x1] ss:$0 sm:$0xff]  ;;  %s1710_s30 = smov 80   ;;  %s1711_s1 = smov 112  }
   0x6   :  { %1577 = vmatpush3.bf16.msra.mxu1 %v1574_v17  ;;  %s1712_s11 = smov 48   ;;  %s1713_s0 = smov [#allocation2]  }
   0x7   :  { %45 = vadd.xlane.f32.xlu0 %v44_v3  ;;  %1579 = vmatprep.subr.bf16.mxu1 %v1578_v19  ;;  %s1354_s17 = sshll.u32 %s1713_s0, 4  ;;  %s1355_s17 = int_to_ptr.vmem [resolvable:$true] %s1354_s17 }
   0x8   :  { %s1682_s18 = scalar_lea.vmem %s1355_s17, 256  ;;  %p1687_p1 = scmp.lt.s32.totalorder %s1355_s17, %s1355_s17 }
   0x9   :  { %p1683_p0 = scmp.ne.s32.totalorder %s1355_s17, %s1682_s18  ;;  %p1688_p2 = scmp.lt.s32.totalorder %s1682_s18, %s1682_s18 }
   0xa   :  { %1581 = vmatpush3.bf16.msra.mxu1 %v1578_v19 }
   0xb   :  { %1463 = vmatprep.subr.mxu1 %v1706_v30  ;;  %p1689_p3 = por %p1688_p2, %p1687_p1 }
   0xd   :  { %p1690_p4 = pnand %p1689_p3, %p1683_p0 }
  0x90   :  { %v43_v4 = vpop.xlane.xlu0 %42 }
  0x91   :  { %v48_v5 = vmul.f32 0.03125, %v43_v4 }
  0x93   :  { %v50_v6 = vsub.f32 %v1774_v0, %v48_v5 }
  0x94   :  { %v46_v7 = vpop.xlane.xlu0 %45 }
  0x95   :  { %v49_v8 = vmul.f32 0.03125, %v46_v7  ;;  %v52_v9 = vmul.f32 %v50_v6, %v50_v6 }
  0x97   :  { %v51_v10 = vsub.f32 %v1779_v1, %v49_v8  ;;  %v54_v11 = vsel %vm40_vm0, %v52_v9, 0.0 }
  0x98   :  { %55 = vadd.xlane.f32.xlu1 %v54_v11 }
  0x99   :  { %v53_v12 = vmul.f32 %v51_v10, %v51_v10 }
  0x9b   :  { %v57_v13 = vsel %vm40_vm0, %v53_v12, 0.0 }
  0x9c   :  { %58 = vadd.xlane.f32.xlu1 %v57_v13 }
 0x125   :  { %v56_v20 = vpop.xlane.xlu1 %55 }
 0x126   :  { %v60_v21 = vmul.f32 0.03125, %v56_v20 }
 0x128   :  { %v62_v22 = vadd.f32 1e-05, %v60_v21 }
 0x129   :  { %v59_v23 = vpop.xlane.xlu1 %58 }
 0x12a   :  { %1650 = vrsqrt.f32 %v62_v22  ;;  %v61_v24 = vmul.f32 0.03125, %v59_v23 }
 0x12c   :  { %v63_v25 = vadd.f32 1e-05, %v61_v24 }
 0x12e   :  { %1652 = vrsqrt.f32 %v63_v25 }
 0x134   :  { %v1651_v26 = vpop.eup %1650 }
 0x135   :  { %v66_v27 = vmul.f32 %v1651_v26, %v50_v6 }
 0x137   :  { %1460 = vmatprep.mubr.msk.f32.mxu1 %vm40_vm0, %v66_v27 }
 0x138   :  { %v1653_v28 = vpop.eup %1652 }
 0x139   :  { %v67_v29 = vmul.f32 %v1653_v28, %v51_v10 }
 0x13b   :  { %1461 = vmatmul.mubr.msk.f32.vlgmr.msra.gmra.mrb[0].mxu1 %vm40_vm0, %v67_v29 }
 0x13c   :  { %1465 = vmatprep.mubr.msk.f32.mxu1 %vm1707_vm1, %v1706_v30 }
 0x20e   :  { %v1462_v32 = vpop.f32.mrb[0].mxu1 }
 0x20f   :  { %v1812_v33 = vadd.f32 %v1462_v32, %v1365_v31  ;;  %v151_v34 = vpop.f32.mrb[1].mxu1 }
 0x210   :  { %v1814_v35 = vadd.f32 %v1365_v31, %v151_v34 }
 0x211   :  { %255 = vrot.lane.b32.xlu1 %v1812_v33, %s1708_s25 }
 0x212   :  { %177 = vrot.lane.b32.xlu0 %v1814_v35, %s1708_s25 }
 0x283   :  { %v256_v37 = vpop.permute.xlu1 %255 }
 0x284   :  { %v178_v36 = vpop.permute.xlu0 %177 }
 0x285   :  { %1464 = vmatpush3.xpose.msk.msra.mxu1 %vm179_vm2, %v178_v36 }
 0x286   :  { %1468 = vmatprep.subr.mxu1 %v1706_v30 }
 0x288   :  { %1466 = vmatmul.mubr.msk.f32.vlgmr.msra.gmra.mrb[2].mxu1 %vm179_vm2, %v1814_v35 }
 0x289   :  { %1469 = vmatpush3.xpose.msk.msra.mxu1 %vm179_vm2, %v256_v37  ;;  %1470 = vmatprep.mubr.msk.f32.mxu1 %vm1707_vm1, %v1706_v30 }
 0x28a   :  { %1473 = vmatprep.subr.mxu1 %v1706_v30 }
 0x28c   :  { %1471 = vmatmul.mubr.msk.f32.vlgmr.msra.gmra.mrb[4].mxu1 %vm179_vm2, %v1812_v33 }
 0x28d   :  { %1475 = vmatprep.mubr.msk.f32.mxu1 %vm1707_vm1, %v1706_v30 }
 0x35b   :  { %v250_v39 = vpop.f32.mrb[2].mxu1 }
 0x35c   :  { %v251_v40 = vadd.f32 %v1833_v38, %v250_v39  ;;  %v1467_v41 = vpop.f32.mrb[3].mxu1  ;;  %v162_v39 = vld [vmem:[%s2016_s6 + $0x10] sm:$0xff] }
 0x35d   :  { %v160_v41 = vld [vmem:[%s2016_s6] sm:$0xff] }
 0x35e   :  { %v332_v43 = vsel %vm331_vm3, %v251_v40, -inf }
 0x35f   :  { %333 = vmax.xlane.f32.xlu1 %v332_v43  ;;  %v327_v44 = vpop.f32.mrb[4].mxu1 }
 0x360   :  { %v328_v45 = vadd.f32 %v1839_v42, %v327_v44  ;;  %v1472_v46 = vpop.f32.mrb[5].mxu1 }
 0x362   :  { %v335_v47 = vsel %vm331_vm3, %v328_v45, -inf }
 0x363   :  { %336 = vmax.xlane.f32.xlu0 %v335_v47 }
 0x370   :  { %430 = vrot.lane.b32.xlu1 %v1812_v33, %s1709_s29 }
 0x374   :  { %508 = vrot.lane.b32.xlu1 %v1814_v35, %s1710_s30 }
 0x378   :  { %586 = vrot.lane.b32.xlu1 %v1812_v33, %s1710_s30 }
 0x3ec   :  { %v334_v48 = vpop.xlane.xlu1 %333 }
 0x3ed   :  { %v338_v49 = vsub.f32 %v251_v40, %v334_v48 }
 0x3ef   :  { %v340_v50 = vmul.f32 1.442695, %v338_v49 }
 0x3f0   :  { %v431_v51 = vpop.permute.xlu1 %430  ;;  %v337_v52 = vpop.xlane.xlu0 %336 }
 0x3f1   :  { %1654 = vpow2.f32 %v340_v50  ;;  %v339_v53 = vsub.f32 %v328_v45, %v337_v52 }
 0x3f3   :  { %v342_v54 = vmul.f32 1.442695, %v339_v53 }
 0x3f4   :  { %v509_v55 = vpop.permute.xlu1 %508 }
 0x3f5   :  { %1656 = vpow2.f32 %v342_v54  ;;  %1484 = vmatpush3.xpose.msk.msra.mxu0 %vm179_vm2, %v509_v55 }
 0x3f6   :  { %1493 = vmatprep.subr.mxu0 %v1706_v30 }
 0x3f8   :  { %v587_v60 = vpop.permute.xlu1 %586 }
 0x3fb   :  { %v1655_v56 = vpop.eup %1654 }
 0x3fc   :  { %v344_v57 = vsel %vm331_vm3, %v1655_v56, 0.0 }
 0x3fd   :  { %345 = vadd.xlane.f32.xlu0 %v344_v57 }
 0x3ff   :  { %v1657_v58 = vpop.eup %1656 }
 0x400   :  { %v347_v59 = vsel %vm331_vm3, %v1657_v58, 0.0 }
 0x401   :  { %348 = vadd.xlane.f32.xlu1 %v347_v59 }
 0x412   :  { %584 = vrot.lane.b32.xlu1 %v1812_v33, %s1711_s1 }
 0x413   :  { %354 = vrot.lane.b32.xlu0 %v1814_v35, %s1709_s29 }
 0x417   :  { %506 = vrot.lane.b32.xlu0 %v1814_v35, %s1711_s1 }
 0x48a   :  { %v346_v61 = vpop.xlane.xlu0 %345 }
 0x48b   :  { %1658 = vrcp.f32 %v346_v61 }
 0x48e   :  { %v349_v62 = vpop.xlane.xlu1 %348  ;;  %v355_v63 = vpop.permute.xlu0 %354 }
 0x48f   :  { %1660 = vrcp.f32 %v349_v62  ;;  %1474 = vmatpush3.msra.mxu1 %v355_v63  ;;  %v1026_v62 = vld [vmem:[%s2017_s7] sm:$0xff]  ;;  %v1027_v63 = vld [vmem:[%s2017_s7 + $0x8] sm:$0xff] }
 0x490   :  { %1478 = vmatprep.subr.mxu1 %v1706_v30 }
 0x492   :  { %v507_v2 = vpop.permute.xlu0 %506  ;;  %v585_v7 = vpop.permute.xlu1 %584 }
 0x493   :  { %1486 = vmatmul.mubr.msk.f32.vlgmr.msra.gmra.mrb[0].mxu0 %vm179_vm2, %v507_v2  ;;  %v1028_v2 = vld [vmem:[%s2017_s7 + $0x10] sm:$0xff] }
 0x494   :  { %1495 = vmatprep.mubr.msk.f32.mxu0 %vm1707_vm1, %v1706_v30 }
 0x495   :  { %v1659_v3 = vpop.eup %1658 }
 0x496   :  { %v352_v4 = vmul.f32 %v1659_v3, %v1655_v56  ;;  %v1590_v3 = vpack.c.bf16 %v1027_v63, %v1026_v62 }
 0x498   :  { %1476 = vmatmul.mubr.msk.f32.vlgmr.msra.gmra.mrb[6].mxu1 %vm331_vm3, %v352_v4  ;;  %v1029_v4 = vld [vmem:[%s2017_s7 + $0x18] sm:$0xff] }
 0x499   :  { %v1661_v5 = vpop.eup %1660  ;;  %1479 = vmatpush3.msra.mxu1 %v431_v51  ;;  %1480 = vmatprep.mubr.msk.f32.mxu1 %vm1707_vm1, %v1706_v30 }
 0x49a   :  { %v353_v6 = vmul.f32 %v1661_v5, %v1657_v58  ;;  %1488 = vmatprep.subr.mxu1 %v1706_v30  ;;  %v1594_v5 = vpack.c.bf16 %v1029_v4, %v1028_v2 }
 0x49c   :  { %1481 = vmatmul.mubr.msk.f32.vlgmr.msra.gmra.mrb[8].mxu1 %vm331_vm3, %v353_v6 }
 0x49d   :  { %1490 = vmatprep.mubr.msk.f32.mxu1 %vm1707_vm1, %v1706_v30 }
 0x4a0   :  { %1489 = vmatpush3.xpose.msk.msra.mxu1 %vm179_vm2, %v587_v60 }
 0x4a1   :  { %1498 = vmatprep.subr.mxu1 %v1706_v30 }
 0x4a3   :  { %1491 = vmatmul.mubr.msk.f32.vlgmr.msra.gmra.mrb[10].mxu1 %vm179_vm2, %v585_v7 }
 0x4a4   :  { %1500 = vmatprep.mubr.msk.f32.mxu1 %vm1707_vm1, %v1706_v30 }
 0x566   :  { %v580_v8 = vpop.f32.mrb[0].mxu0 }
 0x567   :  { %v581_v9 = vadd.f32 %v1833_v38, %v580_v8  ;;  %v1487_v10 = vpop.f32.mrb[1].mxu0 }
 0x569   :  { %v662_v11 = vsel %vm331_vm3, %v581_v9, -inf }
 0x56a   :  { %663 = vmax.xlane.f32.xlu0 %v662_v11 }
 0x56b   :  { %v426_v12 = vpop.f32.mrb[6].mxu1 }
 0x56c   :  { %v1477_v13 = vpop.f32.mrb[7].mxu1 }
 0x56f   :  { %v502_v14 = vpop.f32.mrb[8].mxu1 }
 0x570   :  { %v1482_v15 = vpop.f32.mrb[9].mxu1 }
 0x576   :  { %v658_v16 = vpop.f32.mrb[10].mxu1 }
 0x577   :  { %v659_v17 = vadd.f32 %v1839_v42, %v658_v16  ;;  %v1492_v18 = vpop.f32.mrb[11].mxu1  ;;  %v161_v42 = vld [vmem:[%s2016_s6 + $0x8] sm:$0xff]  ;;  %v1136_v16 = vld [vmem:[%s2018_s8] sm:$0xff] }
 0x578   :  { %v1586_v43 = vpack.c.bf16 %v161_v42, %v160_v41 }
 0x579   :  { %v665_v19 = vsel %vm331_vm3, %v659_v17, -inf }
 0x57a   :  { %666 = vmax.xlane.f32.xlu1 %v665_v19  ;;  %v1138_v19 = vld [vmem:[%s2018_s8 + $0x10] sm:$0xff] }
 0x58b   :  { %760 = vrot.lane.b32.xlu1 %v1812_v33, %s1712_s11 }
 0x5f7   :  { %v664_v20 = vpop.xlane.xlu0 %663 }
 0x5f8   :  { %v668_v21 = vsub.f32 %v581_v9, %v664_v20  ;;  %v1139_v20 = vld [vmem:[%s2018_s8 + $0x18] sm:$0xff] }
 0x5fa   :  { %v670_v22 = vmul.f32 1.442695, %v668_v21  ;;  %v1602_v21 = vpack.c.bf16 %v1139_v20, %v1138_v19  ;;  %v1258_v19 = vld [vmem:[%s2019_s9 + $0x18] sm:$0xff] }
 0x5fc   :  { %1662 = vpow2.f32 %v670_v22  ;;  %v1140_v22 = vld [vmem:[%s2018_s8 + $0x20] sm:$0xff] }
 0x606   :  { %v1663_v23 = vpop.eup %1662 }
 0x607   :  { %v667_v24 = vpop.xlane.xlu1 %666  ;;  %v674_v25 = vsel %vm331_vm3, %v1663_v23, 0.0 }
 0x608   :  { %v669_v26 = vsub.f32 %v659_v17, %v667_v24  ;;  %675 = vadd.xlane.f32.xlu0 %v674_v25  ;;  %v1137_v17 = vld [vmem:[%s2018_s8 + $0x8] sm:$0xff]  ;;  %v1142_v25 = vld [vmem:[%s2018_s8 + $0x30] sm:$0xff] }
 0x609   :  { %v1598_v18 = vpack.c.bf16 %v1137_v17, %v1136_v16  ;;  %v1256_v16 = vld [vmem:[%s2019_s9 + $0x8] sm:$0xff] }
 0x60a   :  { %v672_v27 = vmul.f32 1.442695, %v669_v26  ;;  %v1143_v26 = vld [vmem:[%s2018_s8 + $0x38] sm:$0xff] }
 0x60b   :  { %v761_v28 = vpop.permute.xlu1 %760 }
 0x60c   :  { %1664 = vpow2.f32 %v672_v27  ;;  %1499 = vmatpush3.msra.mxu1 %v761_v28  ;;  %v1610_v27 = vpack.c.bf16 %v1143_v26, %v1142_v25  ;;  %v1144_v28 = vld [vmem:[%s2018_s8 + $0x40] sm:$0xff] }
 0x60d   :  { %1591 = vmatprep.subr.bf16.mxu1 %v1590_v3 }
 0x616   :  { %v1665_v29 = vpop.eup %1664 }
 0x617   :  { %v677_v30 = vsel %vm331_vm3, %v1665_v29, 0.0 }
 0x618   :  { %678 = vadd.xlane.f32.xlu0 %v677_v30  ;;  %v1146_v30 = vld [vmem:[%s2018_s8 + $0x50] sm:$0xff] }
 0x62e   :  { %684 = vrot.lane.b32.xlu0 %v1814_v35, %s1712_s11  ;;  %v163_v35 = vld [vmem:[%s2016_s6 + $0x18] sm:$0xff] }
 0x62f   :  { %v1582_v40 = vpack.c.bf16 %v163_v35, %v162_v39  ;;  %v1151_v39 = vld [vmem:[%s2018_s8 + $0x78] sm:$0xff] }
 0x695   :  { %v676_v31 = vpop.xlane.xlu0 %675 }
 0x696   :  { %1666 = vrcp.f32 %v676_v31 }
 0x6a0   :  { %v1667_v33 = vpop.eup %1666 }
 0x6a1   :  { %v682_v34 = vmul.f32 %v1667_v33, %v1663_v23  ;;  %v1141_v23 = vld [vmem:[%s2018_s8 + $0x28] sm:$0xff] }
 0x6a2   :  { %v1606_v24 = vpack.c.bf16 %v1141_v23, %v1140_v22 }
 0x6a5   :  { %v679_v32 = vpop.xlane.xlu0 %678 }
 0x6a6   :  { %1668 = vrcp.f32 %v679_v32  ;;  %v1147_v32 = vld [vmem:[%s2018_s8 + $0x58] sm:$0xff] }
 0x6a7   :  { %v1618_v33 = vpack.c.bf16 %v1147_v32, %v1146_v30 }
 0x6a9   :  { %v685_v36 = vpop.permute.xlu0 %684 }
 0x6aa   :  { %1494 = vmatpush3.msra.mxu0 %v685_v36  ;;  %v1149_v36 = vld [vmem:[%s2018_s8 + $0x68] sm:$0xff] }
 0x6ab   :  { %1496 = vmatmul.mubr.msk.f32.vlgmr.msra.gmra.mrb[2].mxu0 %vm331_vm3, %v682_v34  ;;  %1583 = vmatprep.subr.bf16.mxu0 %v1582_v40  ;;  %v1148_v34 = vld [vmem:[%s2018_s8 + $0x60] sm:$0xff] }
 0x6ac   :  { %1585 = vmatpush3.bf16.msra.mxu0 %v1582_v40  ;;  %v1386_v40 = vld [vmem:[%s2013_s3] ss:$0 sm:$0xff] }
 0x6ad   :  { %1587 = vmatprep.subr.bf16.mxu0 %v1586_v43 }
 0x6b0   :  { %v1669_v37 = vpop.eup %1668 }
 0x6b1   :  { %v683_v38 = vmul.f32 %v1669_v37, %v1665_v29  ;;  %v1145_v29 = vld [vmem:[%s2018_s8 + $0x48] sm:$0xff]  ;;  %v1622_v37 = vpack.c.bf16 %v1149_v36, %v1148_v34 }
 0x6b2   :  { %v1614_v31 = vpack.c.bf16 %v1145_v29, %v1144_v28 }
 0x6b3   :  { %1501 = vmatmul.mubr.msk.f32.vlgmr.msra.gmra.mrb[12].mxu1 %vm331_vm3, %v683_v38  ;;  %v1150_v38 = vld [vmem:[%s2018_s8 + $0x70] sm:$0xff] }
 0x6b4   :  { %1593 = vmatpush3.bf16.msra.mxu1 %v1590_v3  ;;  %v1626_v35 = vpack.c.bf16 %v1151_v39, %v1150_v38 }
 0x6b5   :  { %1595 = vmatprep.subr.bf16.mxu1 %v1594_v5 }
 0x6b8   :  { %1597 = vmatpush3.bf16.msra.mxu1 %v1594_v5 }
 0x77e   :  { %v756_v44 = vpop.f32.mrb[2].mxu0 }
 0x77f   :  { %v1497_v45 = vpop.f32.mrb[3].mxu0  ;;  %1507 = vmatprep.mubr.msk.f32.mxu0 %vm179_vm2, %v756_v44 }
 0x786   :  { %v832_v46 = vpop.f32.mrb[12].mxu1 }
 0x787   :  { %v1502_v47 = vpop.f32.mrb[13].mxu1  ;;  %1508 = vmatmul.mubr.msk.f32.vlgmr.msra.gmra.mrb[4].mxu0 %vm179_vm2, %v832_v46 }
 0x788   :  { %1589 = vmatpush3.bf16.msra.mxu0 %v1586_v43  ;;  %1514 = vmatprep.mubr.msk.f32.mxu0 %vm179_vm2, %v426_v12 }
 0x789   :  { %1599 = vmatprep.subr.bf16.mxu0 %v1598_v18 }
 0x78f   :  { %1515 = vmatmul.mubr.msk.f32.vlgmr.msra.gmra.mrb[4].mxu0 %vm179_vm2, %v502_v14 }
 0x790   :  { %1601 = vmatpush3.bf16.msra.mxu0 %v1598_v18  ;;  %v1257_v18 = vld [vmem:[%s2019_s9 + $0x10] sm:$0xff] }
 0x791   :  { %1603 = vmatprep.subr.bf16.mxu0 %v1602_v21  ;;  %v1634_v20 = vpack.c.bf16 %v1258_v19, %v1257_v18 }
 0x794   :  { %1605 = vmatpush3.bf16.msra.mxu0 %v1602_v21 }
 0x795   :  { %1607 = vmatprep.subr.bf16.mxu0 %v1606_v24 }
 0x798   :  { %1609 = vmatpush3.bf16.msra.mxu0 %v1606_v24 }
 0x799   :  { %1611 = vmatprep.subr.bf16.mxu0 %v1610_v27 }
 0x79c   :  { %1613 = vmatpush3.bf16.msra.mxu0 %v1610_v27 }
 0x79d   :  { %1615 = vmatprep.subr.bf16.mxu0 %v1614_v31 }
 0x7a0   :  { %1617 = vmatpush3.bf16.msra.mxu0 %v1614_v31  ;;  %v1389_v31 = vld [vmem:[%s2014_s4] ss:$0 sm:$0xff] }
 0x7a1   :  { %1619 = vmatprep.subr.bf16.mxu0 %v1618_v33 }
 0x7a4   :  { %1621 = vmatpush3.bf16.msra.mxu0 %v1618_v33 }
 0x7a5   :  { %1623 = vmatprep.subr.bf16.mxu0 %v1622_v37 }
 0x7a8   :  { %1625 = vmatpush3.bf16.msra.mxu0 %v1622_v37 }
 0x7a9   :  { %1627 = vmatprep.subr.bf16.mxu0 %v1626_v35 }
 0x7ac   :  { %1629 = vmatpush3.bf16.msra.mxu0 %v1626_v35 }
 0x862   :  { %v1516_v48 = vpop.f32.mrb[4].mxu0 }
 0x863   :  { %v1897_v49 = vadd.f32 %v1516_v48, %v1779_v1  ;;  %v989_v50 = vpop.f32.mrb[5].mxu0 }
 0x864   :  { %v1900_v51 = vadd.f32 %v989_v50, %v1774_v0 }
 0x865   :  { %v1003_v52 = vsel %vm40_vm0, %v1897_v49, 0.0 }
 0x866   :  { %1004 = vadd.xlane.f32.xlu0 %v1003_v52  ;;  %v1000_v53 = vsel %vm40_vm0, %v1900_v51, 0.0 }
 0x867   :  { %1001 = vadd.xlane.f32.xlu1 %v1000_v53 }
 0x8f3   :  { %v1005_v54 = vpop.xlane.xlu0 %1004 }
 0x8f4   :  { %v1007_v55 = vmul.f32 0.03125, %v1005_v54  ;;  %v1002_v56 = vpop.xlane.xlu1 %1001 }
 0x8f5   :  { %v1006_v57 = vmul.f32 0.03125, %v1002_v56 }
 0x8f6   :  { %v1009_v58 = vsub.f32 %v1897_v49, %v1007_v55 }
 0x8f7   :  { %v1008_v1 = vsub.f32 %v1900_v51, %v1006_v57 }
 0x8f8   :  { %v1011_v59 = vmul.f32 %v1009_v58, %v1009_v58 }
 0x8f9   :  { %v1010_v60 = vmul.f32 %v1008_v1, %v1008_v1 }
 0x8fa   :  { %v1015_v0 = vsel %vm40_vm0, %v1011_v59, 0.0 }
 0x8fb   :  { %1016 = vadd.xlane.f32.xlu1 %v1015_v0  ;;  %v1012_v61 = vsel %vm40_vm0, %v1010_v60, 0.0 }
 0x8fc   :  { %1013 = vadd.xlane.f32.xlu0 %v1012_v61 }
 0x988   :  { %v1017_v6 = vpop.xlane.xlu1 %1016 }
 0x989   :  { %v1019_v7 = vmul.f32 0.03125, %v1017_v6  ;;  %v1014_v8 = vpop.xlane.xlu0 %1013 }
 0x98a   :  { %v1018_v9 = vmul.f32 0.03125, %v1014_v8 }
 0x98b   :  { %v1021_v10 = vadd.f32 1e-05, %v1019_v7 }
 0x98c   :  { %v1020_v11 = vadd.f32 1e-05, %v1018_v9 }
 0x98d   :  { %1670 = vrsqrt.f32 %v1021_v10 }
 0x98e   :  { %1672 = vrsqrt.f32 %v1020_v11 }
 0x997   :  { %v1671_v12 = vpop.eup %1670 }
 0x998   :  { %v1673_v13 = vpop.eup %1672  ;;  %v1025_v15 = vmul.f32 %v1671_v12, %v1009_v58 }
 0x999   :  { %v1024_v14 = vmul.f32 %v1673_v13, %v1008_v1 }
 0x99b   :  { %1525 = vmatprep.mubr.msk.f32.mxu1 %vm40_vm0, %v1024_v14 }
 0x99c   :  { %1526 = vmatmul.mubr.msk.f32.vlgmr.msra.gmra.mrb[14].mxu1 %vm40_vm0, %v1025_v15 }
 0xa6f   :  { %v1527_v41 = vpop.f32.mrb[14].mxu1 }
 0xa70   :  { %v1115_v42 = vadd.f32 %v1527_v41, %v1386_v40  ;;  %v1109_v43 = vpop.f32.mrb[15].mxu1 }
 0xa71   :  { %v1110_v44 = vadd.f32 %v1386_v40, %v1109_v43 }
 0xa72   :  { %v1119_v45 = vmul.f32 %v1115_v42, %v1115_v42 }
 0xa73   :  { %v1118_v46 = vmul.f32 %v1110_v44, %v1110_v44 }
 0xa74   :  { %v1121_v47 = vmul.f32 %v1119_v45, %v1115_v42 }
 0xa75   :  { %v1120_v48 = vmul.f32 %v1118_v46, %v1110_v44 }
 0xa76   :  { %v1123_v50 = vmul.f32 0.044715, %v1121_v47 }
 0xa77   :  { %v1122_v52 = vmul.f32 0.044715, %v1120_v48 }
 0xa78   :  { %v1125_v53 = vadd.f32 %v1123_v50, %v1115_v42 }
 0xa79   :  { %v1124_v54 = vadd.f32 %v1122_v52, %v1110_v44 }
 0xa7a   :  { %v1127_v55 = vmul.f32 0.7978846, %v1125_v53 }
 0xa7b   :  { %v1126_v56 = vmul.f32 0.7978846, %v1124_v54 }
 0xa7c   :  { %1674 = vtanh.f32 %v1127_v55 }
 0xa7d   :  { %1676 = vtanh.f32 %v1126_v56 }
 0xa86   :  { %v1675_v57 = vpop.eup %1674 }
 0xa87   :  { %v1677_v58 = vpop.eup %1676  ;;  %v1131_v1 = vadd.f32 1.0, %v1675_v57 }
 0xa88   :  { %v1130_v59 = vadd.f32 1.0, %v1677_v58 }
 0xa89   :  { %v1133_v60 = vmul.f32 0.5, %v1131_v1 }
 0xa8a   :  { %v1132_v0 = vmul.f32 0.5, %v1130_v59 }
 0xa8b   :  { %v1135_v62 = vmul.f32 %v1133_v60, %v1115_v42 }
 0xa8c   :  { %v1134_v61 = vmul.f32 %v1132_v0, %v1110_v44 }
 0xa8e   :  { %1560 = vmatprep.mubr.f32.mxu0 %v1134_v61 }
 0xa8f   :  { %1561 = vmatmul.mubr.f32.vlgmr.msra.gmra.mrb[6].mxu0 %v1135_v62 }
 0xb62   :  { %v1562_v63 = vpop.f32.mrb[6].mxu0 }
 0xb63   :  { %v1228_v2 = vadd.f32 %v1562_v63, %v1897_v49  ;;  %v1218_v3 = vpop.f32.mrb[7].mxu0 }
 0xb64   :  { %v1227_v4 = vadd.f32 %v1218_v3, %v1900_v51  ;;  %v1255_v51 = vld [vmem:[%s2019_s9] sm:$0xff] }
 0xb65   :  { %v1232_v5 = vsel %vm40_vm0, %v1228_v2, 0.0  ;;  %v1630_v17 = vpack.c.bf16 %v1256_v16, %v1255_v51 }
 0xb66   :  { %1233 = vadd.xlane.f32.xlu1 %v1232_v5  ;;  %v1229_v6 = vsel %vm40_vm0, %v1227_v4, 0.0 }
 0xb67   :  { %1230 = vadd.xlane.f32.xlu0 %v1229_v6  ;;  %1631 = vmatprep.subr.bf16.mxu1 %v1630_v17 }
 0xb68   :  { %1633 = vmatpush3.bf16.msra.mxu1 %v1630_v17 }
 0xb69   :  { %1635 = vmatprep.subr.bf16.mxu1 %v1634_v20 }
 0xb6c   :  { %1637 = vmatpush3.bf16.msra.mxu1 %v1634_v20 }
 0xbf3   :  { %v1234_v7 = vpop.xlane.xlu1 %1233 }
 0xbf4   :  { %v1236_v8 = vmul.f32 0.03125, %v1234_v7  ;;  %v1231_v9 = vpop.xlane.xlu0 %1230 }
 0xbf5   :  { %v1235_v10 = vmul.f32 0.03125, %v1231_v9 }
 0xbf6   :  { %v1238_v11 = vsub.f32 %v1228_v2, %v1236_v8 }
 0xbf7   :  { %v1237_v12 = vsub.f32 %v1227_v4, %v1235_v10 }
 0xbf8   :  { %v1240_v13 = vmul.f32 %v1238_v11, %v1238_v11 }
 0xbf9   :  { %v1239_v14 = vmul.f32 %v1237_v12, %v1237_v12 }
 0xbfa   :  { %v1244_v15 = vsel %vm40_vm0, %v1240_v13, 0.0 }
 0xbfb   :  { %1245 = vadd.xlane.f32.xlu1 %v1244_v15  ;;  %v1241_v49 = vsel %vm40_vm0, %v1239_v14, 0.0 }
 0xbfc   :  { %1242 = vadd.xlane.f32.xlu0 %v1241_v49 }
 0xc88   :  { %v1246_v21 = vpop.xlane.xlu1 %1245 }
 0xc89   :  { %v1248_v22 = vmul.f32 0.03125, %v1246_v21  ;;  %v1243_v23 = vpop.xlane.xlu0 %1242 }
 0xc8a   :  { %v1247_v24 = vmul.f32 0.03125, %v1243_v23 }
 0xc8b   :  { %v1250_v25 = vadd.f32 1e-05, %v1248_v22 }
 0xc8c   :  { %v1249_v26 = vadd.f32 1e-05, %v1247_v24 }
 0xc8d   :  { %1678 = vrsqrt.f32 %v1250_v25 }
 0xc8e   :  { %1680 = vrsqrt.f32 %v1249_v26 }
 0xc97   :  { %v1679_v27 = vpop.eup %1678 }
 0xc98   :  { %v1681_v28 = vpop.eup %1680  ;;  %v1254_v30 = vmul.f32 %v1679_v27, %v1238_v11 }
 0xc99   :  { %v1253_v29 = vmul.f32 %v1681_v28, %v1237_v12 }
 0xc9b   :  { %1571 = vmatprep.mubr.msk.f32.mxu1 %vm40_vm0, %v1253_v29 }
 0xc9c   :  { %1572 = vmatmul.mubr.msk.f32.vlgmr.msra.gmra.mrb[16].mxu1 %vm40_vm0, %v1254_v30 }
 0xd6f   :  { %v1573_v32 = vpop.f32.mrb[16].mxu1 }
 0xd70   :  { %v1344_v33 = vadd.f32 %v1573_v32, %v1389_v31  ;;  %v1338_v34 = vpop.f32.mrb[17].mxu1 }
 0xd71   :  { %v1339_v36 = vadd.f32 %v1389_v31, %v1338_v34 }
 0xd72   :  { %1348 = vst [vmem:[#allocation2 + $0x8] sm:$0xff] %v1344_v33 }
 0xd73   :  { %1347 = vst [vmem:[#allocation2] sm:$0xff] %v1339_v36 }
 0xd74   :  { %1693 = shalt.err (!%p1690_p4)
}
 0xd75   :  { %s1694_s4 = scalar_lea.hbm %s2020_s10, 256 }
 0xd76   :  { %p1695_p5 = scmp.ne.s32.totalorder %s2020_s10, %s1694_s4  ;;  %p1698_p6 = scmp.lt.u32.totalorder %s1694_s4, %s2020_s10 }
 0xd78   :  { %p1700_p7 = pnand %p1698_p6, %p1695_p5 }
 0xd7a   :  { %1703 = shalt.err (!%p1700_p7)
}
 0xd7b   :  { %s1714_s5 = smov 128   ;;  %s1715_s24 = smov 8  }
 0xd7c   :  { %1360 = dma.vmem_to_hbm [thread:$0]  %s1355_s17, 256, %s2020_s10, [#allocation3], %s1714_s5, %s1714_s5, %s1715_s24  }
 0xd7d   :  { %1704 = dma.done.wait [#allocation3], 256  }
 0xd7e   :  { %1705 = vsyncadd [#allocation3], 4294967040 }
 0xd7f   :  { %1364 = vsyncpa [#allocation3], 1 }

</bundles_post_ra>
